<compile_context>
chip_gen: v7x
topology: tpu7x:2x2x1
jax: 0.10.0
libtpu: 0.0.40
codegen_flags: <defaults>
</compile_context>

<pallas_src>
import functools

import jax
import jax.numpy as jnp
from jax import lax
from jax.experimental import pallas as pl
from jax.experimental.pallas import tpu as pltpu


def _round_up(x, m):
    return ((x + m - 1) // m) * m


def _cnn_kernel(x_ref, w_ref, b_ref, out_ref, *, rb):
    """One batch tile: im2col-matmul + bias + ReLU + max over time.

    x_ref:   (TB, L_pad, KC_pad)  im2col'd input tile, bf16 (lane dim = KC_pad)
    w_ref:   (KC_pad, E_pad)      flattened conv weight, bf16
    b_ref:   (1, E_pad)           conv bias, f32
    out_ref: (TB, E_pad)          result tile, bf16
    """
    TB, L_pad, KC = x_ref.shape
    _, E = w_ref.shape
    n_sub = TB // rb

    # Hoisted loop invariants (constant index_maps keep these VMEM-resident).
    w = w_ref[...]
    b = b_ref[...]

    def body(s, carry):
        r0 = pl.multiple_of(s * rb, rb)
        # (rb, L_pad, KC) -> (rb*L_pad, KC): L_pad is a multiple of 8, so this
        # merge of sublane-contiguous dims is layout-free.
        xs = x_ref[pl.ds(r0, rb), :, :].reshape(rb * L_pad, KC)
        # Single full-contraction MXU pass, f32 accumulation.
        acc = jnp.dot(xs, w, preferred_element_type=jnp.float32)
        # f32 epilogue: bias, ReLU, sublane-aligned max over time.
        acc = jnp.maximum(acc + b, 0.0)
        res = jnp.max(acc.reshape(rb, L_pad, E), axis=1)
        out_ref[pl.ds(r0, rb), :] = res.astype(out_ref.dtype)
        return carry

    lax.fori_loop(0, n_sub, body, 0, unroll=min(8, n_sub))


def cnn_forward(x, weight, bias, kernel_size=5, padding=1, *,
                block_b=512, compute_dtype=jnp.bfloat16):
    """x: (B, e_char, m_word); weight: (e_word, e_char, K); bias: (e_word,)."""
    B, C, M = x.shape
    E, C_w, K = weight.shape
    assert C_w == C and K == kernel_size
    L = M + 2 * padding - K + 1
    assert L >= 1, "m_word too small for this kernel_size/padding"

    RB = 8                                   # rows per in-kernel sub-tile
    L_pad = _round_up(L, 8)                  # sublane-aligned max-over-time
    KC = K * C
    KC_pad = _round_up(KC, 128)              # lane-dense contraction dim
    E_pad = _round_up(E, 128)                # lane-dense output
    TB = _round_up(min(block_b, _round_up(B, RB)), RB)
    B_pad = _round_up(B, TB)

    # ---- glue (plain JAX): pad time, im2col, lane/sublane padding ----
    # (B, C, M) -> pad time -> (B, M+2p, C) time-major.
    x_t = jnp.transpose(jnp.pad(x, ((0, 0), (0, 0), (padding, padding))),
                        (0, 2, 1))
    # im2col: K shifted views concatenated on the channel axis -> (B, L, K*C),
    # ordering is k-major / c-minor (matches the weight flatten below).
    cols = jnp.concatenate([x_t[:, k:k + L, :] for k in range(K)], axis=-1)
    # Pad time by EDGE replication: duplicated valid positions leave the
    # max-over-time unchanged, so no -inf masking is needed in the kernel.
    cols = jnp.pad(cols, ((0, 0), (0, L_pad - L), (0, 0)), mode="edge")
    cols = jnp.pad(cols, ((0, B_pad - B), (0, 0), (0, KC_pad - KC)))
    cols = cols.astype(compute_dtype)

    # PyTorch weight (E, C, K) -> (K*C, E) with k-major/c-minor rows, padded
    # to a full 128-wide contraction and a lane-dense E_pad output.
    w_t = jnp.transpose(weight, (2, 1, 0)).reshape(KC, E)
    w_t = jnp.pad(w_t, ((0, KC_pad - KC), (0, E_pad - E))).astype(compute_dtype)

    b_t = jnp.pad(bias, (0, E_pad - E)).reshape(1, E_pad).astype(jnp.float32)

    grid = (B_pad // TB,)
    out = pl.pallas_call(
        functools.partial(_cnn_kernel, rb=RB),
        out_shape=jax.ShapeDtypeStruct((B_pad, E_pad), compute_dtype),
        grid=grid,
        in_specs=[
            pl.BlockSpec((TB, L_pad, KC_pad), lambda i: (i, 0, 0)),  # per tile
            pl.BlockSpec((KC_pad, E_pad), lambda i: (0, 0)),         # resident
            pl.BlockSpec((1, E_pad), lambda i: (0, 0)),              # resident
        ],
        out_specs=pl.BlockSpec((TB, E_pad), lambda i: (i, 0)),
        compiler_params=pltpu.CompilerParams(
            dimension_semantics=("parallel",),     # shard batch tiles across TCs
            vmem_limit_bytes=32 * 1024 * 1024,     # few-MiB tiles; safe v5e/v6e/v7x
        ),
    )(cols, w_t, b_t)

    # Slice off padded batch rows / e_word columns and restore the input dtype.
    return out[:B, :E].astype(x.dtype)


def _reference(x, weight, bias, padding):
    conv = lax.conv_general_dilated(
        x, weight, window_strides=(1,), padding=[(padding, padding)],
        dimension_numbers=("NCH", "OIH", "NCH"))
    return jnp.max(jnp.maximum(conv + bias[None, :, None], 0.0), axis=2)


if __name__ == "__main__":
    # Small shapes consistent with the module's forward signature.
    e_char, m_word = 8, 16
    e_word, kernel_size, padding = 32, 5, 1

    key = jax.random.PRNGKey(0)
    k_x, k_w, k_b, k_x2 = jax.random.split(key, 4)

    weight = 0.1 * jax.random.normal(k_w, (e_word, e_char, kernel_size),
                                     dtype=jnp.float32)
    bias = 0.1 * jax.random.normal(k_b, (e_word,), dtype=jnp.float32)

    # bf16-cast reference weights (kernel streams bf16, accumulates in f32).
    w_q = weight.astype(jnp.bfloat16).astype(jnp.float32)

    # --- case 1: tiny batch, single grid step ---
    B = 2
    x = jax.random.normal(k_x, (B, e_char, m_word), dtype=jnp.float32)
    out = jax.block_until_ready(
        cnn_forward(x, weight, bias, kernel_size=kernel_size, padding=padding))
    x_q = x.astype(jnp.bfloat16).astype(jnp.float32)
    ref_q = _reference(x_q, w_q, bias, padding)     # cast-matched reference
    ref_f = _reference(x, weight, bias, padding)    # pure-f32 reference
    assert out.shape == (B, e_word)
    # bf16 output store -> ~0.4% relative rounding on top of f32 accumulation.
    assert jnp.allclose(out, ref_q, atol=2e-2, rtol=2e-2)
    assert jnp.allclose(out, ref_f, atol=5e-2, rtol=5e-2)

    # --- case 2: B not a multiple of the tile -> exercises grid + padding path ---
    B2 = 20
    x2 = jax.random.normal(k_x2, (B2, e_char, m_word), dtype=jnp.float32)
    out2 = jax.block_until_ready(
        cnn_forward(x2, weight, bias, kernel_size=kernel_size, padding=padding,
                    block_b=8))
    x2_q = x2.astype(jnp.bfloat16).astype(jnp.float32)
    ref2_q = _reference(x2_q, w_q, bias, padding)
    assert out2.shape == (B2, e_word)
    assert jnp.allclose(out2, ref2_q, atol=2e-2, rtol=2e-2)

    print("KERNEL_OK")
</pallas_src>

<mosaic_0001>
module attributes {stable_mosaic.version = 11 : i64} {
  func.func @_cnn_kernel(%arg0: i32, %arg1: memref<8x16x128xbf16, #tpu.memory_space<vmem>>, %arg2: memref<128x128xbf16, #tpu.memory_space<vmem>>, %arg3: memref<1x128xf32, #tpu.memory_space<vmem>>, %arg4: memref<8x128xbf16, #tpu.memory_space<vmem>>) attributes {dimension_semantics = [#tpu.dimension_semantics<parallel>], iteration_bounds = array<i64: 1>, scalar_prefetch = 0 : i64, scratch_operands = 0 : i64, tpu.core_type = #tpu.core_type<tc>, window_params = [{transform_indices = @transform_0, window_bounds = array<i64: 8, 16, 128>}, {pipeline_mode = #tpu.pipeline_mode<synchronous>, transform_indices = @transform_1, window_bounds = array<i64: 128, 128>}, {pipeline_mode = #tpu.pipeline_mode<synchronous>, transform_indices = @transform_2, window_bounds = array<i64: 1, 128>}, {transform_indices = @transform_3, window_bounds = array<i64: 8, 128>}]} {
    %c0 = arith.constant 0 : index
    %c0_0 = arith.constant 0 : index
    %0 = vector.load %arg2[%c0, %c0_0] : memref<128x128xbf16, #tpu.memory_space<vmem>>, vector<128x128xbf16>
    %c0_1 = arith.constant 0 : index
    %c0_2 = arith.constant 0 : index
    %1 = vector.load %arg3[%c0_1, %c0_2] : memref<1x128xf32, #tpu.memory_space<vmem>>, vector<1x128xf32>
    %c0_i32 = arith.constant 0 : i32
    %c8_i32 = arith.constant 8 : i32
    %2 = arith.muli %c0_i32, %c8_i32 : i32
    %3 = tpu.assume_multiple %2, 8 : i32
    %4 = arith.index_cast %3 : i32 to index
    %c0_3 = arith.constant 0 : index
    %c0_4 = arith.constant 0 : index
    %5 = vector.load %arg1[%4, %c0_3, %c0_4] : memref<8x16x128xbf16, #tpu.memory_space<vmem>>, vector<8x16x128xbf16>
    %6 = vector.shape_cast %5 : vector<8x16x128xbf16> to vector<128x128xbf16>
    %cst = arith.constant dense<0.000000e+00> : vector<128x128xf32>
    %7 = tpu.matmul %6, %0, %cst {dimension_numbers = #tpu.dot_dimension_numbers<[1], [0], [0], [1], [0, 0, 1, 1], [], []>} : vector<128x128xbf16>, vector<128x128xbf16>, vector<128x128xf32> -> vector<128x128xf32>
    %8 = vector.broadcast %1 : vector<1x128xf32> to vector<128x128xf32>
    %9 = arith.addf %7, %8 : vector<128x128xf32>
    %cst_5 = arith.constant 0.000000e+00 : f32
    %10 = vector.broadcast %cst_5 : f32 to vector<128x128xf32>
    %11 = arith.maximumf %9, %10 : vector<128x128xf32>
    %12 = vector.shape_cast %11 : vector<128x128xf32> to vector<8x16x128xf32>
    %cst_6 = arith.constant dense<0xFF800000> : vector<8x128xf32>
    %13 = vector.multi_reduction <maximumf>, %12, %cst_6 [1] : vector<8x16x128xf32> to vector<8x128xf32>
    %14 = arith.truncf %13 : vector<8x128xf32> to vector<8x128xbf16>
    %15 = arith.index_cast %3 : i32 to index
    %c0_7 = arith.constant 0 : index
    %16 = vector.load %arg4[%15, %c0_7] : memref<8x128xbf16, #tpu.memory_space<vmem>>, vector<8x128xbf16>
    tpu.vector_store %arg4[%15, %c0_7], %14 {strides = array<i32>} : memref<8x128xbf16, #tpu.memory_space<vmem>>, vector<8x128xbf16>,
    %c1_i32 = arith.constant 1 : i32
    return
  }
  func.func @transform_0(%arg0: i32) -> (i32, i32, i32) {
    %c0_i32 = arith.constant 0 : i32
    %c0_i32_0 = arith.constant 0 : i32
    %c0_i32_1 = arith.constant 0 : i32
    return %arg0, %c0_i32, %c0_i32_0 : i32, i32, i32
  }
  func.func @transform_1(%arg0: i32) -> (i32, i32) {
    %c0_i32 = arith.constant 0 : i32
    %c0_i32_0 = arith.constant 0 : i32
    %c0_i32_1 = arith.constant 0 : i32
    return %c0_i32, %c0_i32_0 : i32, i32
  }
  func.func @transform_2(%arg0: i32) -> (i32, i32) {
    %c0_i32 = arith.constant 0 : i32
    %c0_i32_0 = arith.constant 0 : i32
    %c0_i32_1 = arith.constant 0 : i32
    return %c0_i32, %c0_i32_0 : i32, i32
  }
  func.func @transform_3(%arg0: i32) -> (i32, i32) {
    %c0_i32 = arith.constant 0 : i32
    %c0_i32_0 = arith.constant 0 : i32
    return %arg0, %c0_i32 : i32, i32
  }
}

</mosaic_0001>

<bundles_post_ra>
// kernel: tpu_custom_call.1
= control target key start
LH: loop header
LB: loop body
LE: loop exit
PB: predicated region body
PF: predicated region fallthrough
CT: control target
= control target key end

     0   :  { %8 = vsyncpa [#allocation3], 0  ;;  %s678_s0 = inlined_call_operand.hbm [shape: bf16[8,16,128], index: 0, kind: input, shape index: {}]   ;;  %s679_s1 = inlined_call_operand.hbm [shape: bf16[128,128], index: 1, kind: input, shape index: {}]   ;;  %s680_s2 = inlined_call_operand.vmem [shape: f32[1,128], index: 2, kind: input, shape index: {}]   ;;  %s681_s3 = inlined_call_operand.hbm [shape: bf16[8,128], index: 3, kind: output, shape index: {}]  }
   0x1   :  { %9 = vsyncpa [#allocation6], 0 }
   0x2   :  { %10 = vsyncpa [#allocation4], 0  ;;  %s614_s12 = smov [#allocation2]   ;;  %s542_s16 = scalar_lea.hbm %s678_s0, 1024 }
   0x3   :  { %s16_s13 = sshll.u32 %s614_s12, 4  ;;  %p543_p0 = scmp.ne.s32.totalorder %s678_s0, %s542_s16  ;;  %s17_s13 = int_to_ptr.vmem [resolvable:$true] %s16_s13 }
   0x4   :  { %p546_p1 = scmp.lt.u32.totalorder %s542_s16, %s678_s0 }
   0x6   :  { %p548_p2 = pnand %p546_p1, %p543_p0 }
   0x8   :  { %551 = shalt.err (!%p548_p2)
}
   0x9   :  { %s552_s21 = scalar_lea.vmem %s17_s13, 1024  ;;  %p557_p4 = scmp.lt.s32.totalorder %s17_s13, %s17_s13 }
   0xa   :  { %p553_p3 = scmp.ne.s32.totalorder %s17_s13, %s552_s21  ;;  %p558_p5 = scmp.lt.s32.totalorder %s552_s21, %s552_s21 }
   0xc   :  { %p559_p6 = por %p558_p5, %p557_p4 }
   0xe   :  { %p560_p7 = pnand %p559_p6, %p553_p3 }
  0x10   :  { %563 = shalt.err (!%p560_p7)
}
  0x11   :  { %s615_s22 = smov 64   ;;  %s616_s23 = smov 4  }
  0x12   :  { %22 = dma.hbm_to_vmem [thread:$0]  %s678_s0, 1024, %s17_s13, [#allocation3], %s615_s22, %s615_s22, %s616_s23  }
  0x13   :  { %s617_s26 = smov [#allocation5]   ;;  %s564_s30 = scalar_lea.hbm %s679_s1, 1024 }
  0x14   :  { %s28_s27 = sshll.u32 %s617_s26, 4  ;;  %p565_p8 = scmp.ne.s32.totalorder %s679_s1, %s564_s30  ;;  %s29_s27 = int_to_ptr.vmem [resolvable:$true] %s28_s27 }
  0x15   :  { %p568_p9 = scmp.lt.u32.totalorder %s564_s30, %s679_s1 }
  0x17   :  { %p570_p10 = pnand %p568_p9, %p565_p8 }
  0x19   :  { %573 = shalt.err (!%p570_p10)
}
  0x1a   :  { %s574_s8 = scalar_lea.vmem %s29_s27, 1024  ;;  %p579_p12 = scmp.lt.s32.totalorder %s29_s27, %s29_s27 }
  0x1b   :  { %p575_p11 = scmp.ne.s32.totalorder %s29_s27, %s574_s8  ;;  %p580_p13 = scmp.lt.s32.totalorder %s574_s8, %s574_s8 }
  0x1d   :  { %p581_p0 = por %p580_p13, %p579_p12 }
  0x1f   :  { %p582_p1 = pnand %p581_p0, %p575_p11 }
  0x21   :  { %585 = shalt.err (!%p582_p1)
}
  0x22   :  { %34 = dma.hbm_to_vmem [thread:$0]  %s679_s1, 1024, %s29_s27, [#allocation6], %s615_s22, %s615_s22, %s616_s23  }
  0x23   :  { %608 = dma.done.wait [#allocation3], 1024  }
  0x24   :  { %609 = vsyncadd [#allocation3], 4294966272 }
  0x25   :  { %610 = dma.done.wait [#allocation6], 1024  }
  0x26   :  { %611 = vsyncadd [#allocation6], 4294966272  ;;  %v526_v0 = vld [vmem:[#allocation5] sm:$0xff]   ;;  %v527_v1 = vld [vmem:[#allocation5 + $0x8] sm:$0xff]   ;;  %vm391_vm0 = vcmask 1041409   ;;  %vm393_vm1 = vcmask 1042434  }
  0x27   :  { %473 = vmatprep.subr.bf16.mxu0 %v526_v0  ;;  %505 = vmatprep.subr.bf16.mxu1 %v526_v0  ;;  %v528_v2 = vld [vmem:[#allocation5 + $0x10] sm:$0xff]   ;;  %v529_v3 = vld [vmem:[#allocation5 + $0x18] sm:$0xff]   ;;  %v534_v4 = vld [vmem:[#allocation2] sm:$0xff]   ;;  %vm395_vm2 = vcmask 1043459   ;;  %vm397_vm3 = vcmask 1044484   ;;  %vm399_vm4 = vcmask 1045509  }
  0x28   :  { %474 = vmatpush3.bf16.msra.mxu0 %v526_v0  ;;  %513 = vmatpush3.bf16.msra.mxu1 %v526_v0  ;;  %v535_v5 = vld [vmem:[#allocation2 + $0x20] sm:$0xff]   ;;  %v531_v7 = vld [vmem:[#allocation5 + $0x28] sm:$0xff]   ;;  %v532_v8 = vld [vmem:[#allocation5 + $0x30] sm:$0xff]   ;;  %vm401_vm5 = vcmask 1046534   ;;  %vm403_vm6 = vcmask 1047559  }
  0x29   :  { %475 = vmatprep.subr.bf16.mxu0 %v527_v1  ;;  %506 = vmatprep.subr.bf16.mxu1 %v527_v1  ;;  %v530_v6 = vld [vmem:[#allocation5 + $0x20] sm:$0xff]   ;;  %v533_v9 = vld [vmem:[#allocation5 + $0x38] sm:$0xff]   ;;  %v536_v10 = vld [vmem:[#allocation2 + $0x8] sm:$0xff]  }
  0x2a   :  { %489 = vmatprep.mubr.bf16.mxu0 %v534_v4  ;;  %497 = vmatprep.mubr.bf16.mxu1 %v535_v5  ;;  %v537_v11 = vld [vmem:[#allocation2 + $0x28] sm:$0xff]   ;;  %v538_v12 = vld [vmem:[#allocation2 + $0x10] sm:$0xff]   ;;  %v540_v14 = vld [vmem:[#allocation2 + $0x18] sm:$0xff]  }
  0x2b   :  { %v539_v13 = vld [vmem:[#allocation2 + $0x30] sm:$0xff]   ;;  %v541_v15 = vld [vmem:[#allocation2 + $0x38] sm:$0xff]   ;;  %v424_v16 = vld [vmem:[%s680_s2] ss:$0 sm:$0xff]  ;;  %s618_s2 = smov [#allocation7]  }
  0x2c   :  { %476 = vmatpush3.bf16.msra.mxu0 %v527_v1  ;;  %514 = vmatpush3.bf16.msra.mxu1 %v527_v1  ;;  %s414_s11 = sshll.u32 %s618_s2, 4  ;;  %s415_s11 = int_to_ptr.vmem [resolvable:$true] %s414_s11 }
  0x2d   :  { %477 = vmatprep.subr.bf16.mxu0 %v528_v2  ;;  %507 = vmatprep.subr.bf16.mxu1 %v528_v2  ;;  %s586_s12 = scalar_lea.vmem %s415_s11, 64  ;;  %p591_p3 = scmp.lt.s32.totalorder %s415_s11, %s415_s11 }
  0x2e   :  { %p587_p2 = scmp.ne.s32.totalorder %s415_s11, %s586_s12  ;;  %p592_p4 = scmp.lt.s32.totalorder %s586_s12, %s586_s12 }
  0x30   :  { %478 = vmatpush3.bf16.msra.mxu0 %v528_v2  ;;  %515 = vmatpush3.bf16.msra.mxu1 %v528_v2  ;;  %p593_p5 = por %p592_p4, %p591_p3 }
  0x31   :  { %479 = vmatprep.subr.bf16.mxu0 %v529_v3  ;;  %508 = vmatprep.subr.bf16.mxu1 %v529_v3 }
  0x32   :  { %p594_p6 = pnand %p593_p5, %p587_p2 }
  0x34   :  { %480 = vmatpush3.bf16.msra.mxu0 %v529_v3  ;;  %516 = vmatpush3.bf16.msra.mxu1 %v529_v3 }
  0x35   :  { %481 = vmatprep.subr.bf16.mxu0 %v530_v6  ;;  %509 = vmatprep.subr.bf16.mxu1 %v530_v6 }
  0x38   :  { %482 = vmatpush3.bf16.msra.mxu0 %v530_v6  ;;  %517 = vmatpush3.bf16.msra.mxu1 %v530_v6 }
  0x39   :  { %483 = vmatprep.subr.bf16.mxu0 %v531_v7  ;;  %510 = vmatprep.subr.bf16.mxu1 %v531_v7 }
  0x3c   :  { %484 = vmatpush3.bf16.msra.mxu0 %v531_v7  ;;  %518 = vmatpush3.bf16.msra.mxu1 %v531_v7 }
  0x3d   :  { %485 = vmatprep.subr.bf16.mxu0 %v532_v8  ;;  %511 = vmatprep.subr.bf16.mxu1 %v532_v8 }
  0x40   :  { %486 = vmatpush3.bf16.msra.mxu0 %v532_v8  ;;  %519 = vmatpush3.bf16.msra.mxu1 %v532_v8 }
  0x41   :  { %487 = vmatprep.subr.bf16.mxu0 %v533_v9  ;;  %512 = vmatprep.subr.bf16.mxu1 %v533_v9 }
  0x44   :  { %488 = vmatpush3.bf16.msra.mxu0 %v533_v9  ;;  %520 = vmatpush3.bf16.msra.mxu1 %v533_v9 }
  0x47   :  { %490 = vmatmul.mubr.bf16.vlgmr.msra.gmra.mrb[0].mxu0 %v536_v10  ;;  %498 = vmatmul.mubr.bf16.vlgmr.msra.gmra.mrb[0].mxu1 %v537_v11 }
  0x48   :  { %493 = vmatprep.mubr.bf16.mxu0 %v538_v12  ;;  %501 = vmatprep.mubr.bf16.mxu1 %v539_v13 }
  0x4f   :  { %494 = vmatmul.mubr.bf16.gmra.mrb[4].mxu0 %v540_v14  ;;  %502 = vmatmul.mubr.bf16.gmra.mrb[4].mxu1 %v541_v15 }
 0x11a   :  { %v491_v17 = vpop.f32.mrb[0].mxu0  ;;  %v499_v18 = vpop.f32.mrb[0].mxu1 }
 0x11b   :  { %v225_v19 = vadd.f32 %v491_v17, %v424_v16  ;;  %v257_v20 = vadd.f32 %v499_v18, %v424_v16  ;;  %v216_v21 = vpop.f32.mrb[1].mxu0  ;;  %v248_v22 = vpop.f32.mrb[1].mxu1 }
 0x11c   :  { %v217_v23 = vadd.f32 %v424_v16, %v216_v21  ;;  %v249_v24 = vadd.f32 %v424_v16, %v248_v22  ;;  %v492_v25 = vpop.f32.mrb[2].mxu0  ;;  %v500_v26 = vpop.f32.mrb[2].mxu1 }
 0x11d   :  { %v289_v27 = vmax.f32 %v257_v20, 0.0  ;;  %v228_v28 = vadd.f32 %v492_v25, %v424_v16  ;;  %v260_v29 = vadd.f32 %v500_v26, %v424_v16  ;;  %v219_v30 = vpop.f32.mrb[3].mxu0  ;;  %v251_v31 = vpop.f32.mrb[3].mxu1  ;;  %v281_v35 = vmax.f32 %v225_v19, 0.0 }
 0x11e   :  { %v287_v32 = vmax.f32 %v249_v24, 0.0  ;;  %v220_v33 = vadd.f32 %v424_v16, %v219_v30  ;;  %v252_v34 = vadd.f32 %v424_v16, %v251_v31  ;;  %v279_v38 = vmax.f32 %v217_v23, 0.0 }
 0x11f   :  { %v282_v36 = vmax.f32 %v228_v28, 0.0  ;;  %v290_v37 = vmax.f32 %v260_v29, 0.0 }
 0x120   :  { %v280_v39 = vmax.f32 %v220_v33, 0.0  ;;  %v288_v40 = vmax.f32 %v252_v34, 0.0 }
 0x121   :  { %v302_v41 = vmax.f32 %v281_v35, %v282_v36  ;;  %v330_v42 = vmax.f32 %v289_v27, %v290_v37 }
 0x122   :  { %v295_v43 = vmax.f32 %v279_v38, %v280_v39  ;;  %v323_v44 = vmax.f32 %v287_v32, %v288_v40  ;;  %v495_v45 = vpop.f32.mrb[4].mxu0  ;;  %v503_v46 = vpop.f32.mrb[4].mxu1 }
 0x123   :  { %v303_v47 = vrot.slane %v302_v41, 4  ;;  %v331_v48 = vrot.slane %v330_v42, 4  ;;  %v241_v49 = vadd.f32 %v495_v45, %v424_v16  ;;  %v273_v50 = vadd.f32 %v503_v46, %v424_v16  ;;  %v232_v51 = vpop.f32.mrb[5].mxu0  ;;  %v264_v52 = vpop.f32.mrb[5].mxu1 }
 0x124   :  { %v296_v53 = vrot.slane %v295_v43, 4  ;;  %v324_v54 = vrot.slane %v323_v44, 4  ;;  %v265_v55 = vadd.f32 %v424_v16, %v264_v52  ;;  %v496_v56 = vpop.f32.mrb[6].mxu0  ;;  %v504_v57 = vpop.f32.mrb[6].mxu1  ;;  %v233_v59 = vadd.f32 %v424_v16, %v232_v51 }
 0x125   :  { %v304_v58 = vmax.f32 %v302_v41, %v303_v47  ;;  %v235_v60 = vpop.f32.mrb[7].mxu0  ;;  %v267_v61 = vpop.f32.mrb[7].mxu1  ;;  %v332_v62 = vmax.f32 %v330_v42, %v331_v48  ;;  %v285_v1 = vmax.f32 %v241_v49, 0.0  ;;  %v293_v3 = vmax.f32 %v273_v50, 0.0 }
 0x126   :  { %v297_v63 = vmax.f32 %v295_v43, %v296_v53  ;;  %v325_v0 = vmax.f32 %v323_v44, %v324_v54  ;;  %v244_v4 = vadd.f32 %v496_v56, %v424_v16  ;;  %v276_v5 = vadd.f32 %v504_v57, %v424_v16 }
 0x127   :  { %v305_v2 = vrot.slane %v304_v58, 2  ;;  %v291_v7 = vmax.f32 %v265_v55, 0.0  ;;  %v236_v8 = vadd.f32 %v424_v16, %v235_v60  ;;  %v268_v9 = vadd.f32 %v424_v16, %v267_v61 }
 0x128   :  { %v298_v6 = vrot.slane %v297_v63, 2  ;;  %v283_v11 = vmax.f32 %v233_v59, 0.0  ;;  %v286_v12 = vmax.f32 %v244_v4, 0.0  ;;  %v294_v13 = vmax.f32 %v276_v5, 0.0 }
 0x129   :  { %v306_v10 = vmax.f32 %v304_v58, %v305_v2  ;;  %v326_v15 = vrot.slane %v325_v0, 2  ;;  %v284_v17 = vmax.f32 %v236_v8, 0.0  ;;  %v292_v18 = vmax.f32 %v268_v9, 0.0 }
 0x12a   :  { %v299_v14 = vmax.f32 %v297_v63, %v298_v6  ;;  %v333_v20 = vrot.slane %v332_v62, 2  ;;  %v316_v21 = vmax.f32 %v285_v1, %v286_v12  ;;  %v344_v22 = vmax.f32 %v293_v3, %v294_v13 }
 0x12b   :  { %v307_v19 = vrot.slane %v306_v10, 1  ;;  %v309_v24 = vmax.f32 %v283_v11, %v284_v17  ;;  %v337_v25 = vmax.f32 %v291_v7, %v292_v18  ;;  %v327_v16 = vmax.f32 %v325_v0, %v326_v15 }
 0x12c   :  { %v300_v23 = vrot.slane %v299_v14, 1  ;;  %v317_v27 = vrot.slane %v316_v21, 4  ;;  %v345_v28 = vrot.slane %v344_v22, 4  ;;  %v334_v33 = vmax.f32 %v332_v62, %v333_v20 }
 0x12d   :  { %v308_v26 = vmax.f32 %v306_v10, %v307_v19  ;;  %v310_v30 = vrot.slane %v309_v24, 4  ;;  %v338_v31 = vrot.slane %v337_v25, 4  ;;  %v328_v43 = vrot.slane %v327_v16, 1 }
 0x12e   :  { %v301_v29 = vmax.f32 %v299_v14, %v300_v23  ;;  %v318_v34 = vmax.f32 %v316_v21, %v317_v27  ;;  %v346_v35 = vmax.f32 %v344_v22, %v345_v28  ;;  %v335_v46 = vrot.slane %v334_v33, 1 }
 0x12f   :  { %v450_v32 = vpack.c.bf16 %v308_v26, %v308_v26  ;;  %v311_v37 = vmax.f32 %v309_v24, %v310_v30  ;;  %v339_v38 = vmax.f32 %v337_v25, %v338_v31  ;;  %v329_v54 = vmax.f32 %v327_v16, %v328_v43 }
 0x130   :  { %v449_v36 = vpack.c.bf16 %v301_v29, %v301_v29  ;;  %v319_v40 = vrot.slane %v318_v34, 2  ;;  %v347_v41 = vrot.slane %v346_v35, 2  ;;  %v336_v57 = vmax.f32 %v334_v33, %v335_v46 }
 0x131   :  { %v384_v39 = vunpack.c.l.b16 %v450_v32  ;;  %v312_v44 = vrot.slane %v311_v37, 2  ;;  %v340_v45 = vrot.slane %v339_v38, 2  ;;  %v453_v63 = vpack.c.bf16 %v329_v54, %v329_v54 }
 0x132   :  { %v383_v42 = vunpack.c.l.b16 %v449_v36  ;;  %v320_v47 = vmax.f32 %v318_v34, %v319_v40  ;;  %v348_v48 = vmax.f32 %v346_v35, %v347_v41  ;;  %v454_v1 = vpack.c.bf16 %v336_v57, %v336_v57 }
 0x133   :  { %v313_v50 = vmax.f32 %v311_v37, %v312_v44  ;;  %v341_v51 = vmax.f32 %v339_v38, %v340_v45  ;;  %v387_v6 = vunpack.c.l.b16 %v453_v63 }
 0x134   :  { %v392_v49 = vsel %vm391_vm0, %v384_v39, %v383_v42  ;;  %v321_v52 = vrot.slane %v320_v47, 1  ;;  %v349_v53 = vrot.slane %v348_v48, 1  ;;  %v388_v8 = vunpack.c.l.b16 %v454_v1 }
 0x135   :  { %v314_v55 = vrot.slane %v313_v50, 1  ;;  %v342_v56 = vrot.slane %v341_v51, 1 }
 0x136   :  { %v322_v58 = vmax.f32 %v320_v47, %v321_v52  ;;  %v350_v62 = vmax.f32 %v348_v48, %v349_v53 }
 0x137   :  { %v315_v59 = vmax.f32 %v313_v50, %v314_v55  ;;  %v343_v60 = vmax.f32 %v341_v51, %v342_v56 }
 0x138   :  { %v452_v61 = vpack.c.bf16 %v322_v58, %v322_v58  ;;  %v456_v5 = vpack.c.bf16 %v350_v62, %v350_v62 }
 0x139   :  { %v451_v0 = vpack.c.bf16 %v315_v59, %v315_v59  ;;  %v455_v3 = vpack.c.bf16 %v343_v60, %v343_v60 }
 0x13a   :  { %v386_v4 = vunpack.c.l.b16 %v452_v61  ;;  %v390_v12 = vunpack.c.l.b16 %v456_v5 }
 0x13b   :  { %v385_v2 = vunpack.c.l.b16 %v451_v0  ;;  %v389_v10 = vunpack.c.l.b16 %v455_v3 }
 0x13d   :  { %v394_v7 = vsel %vm393_vm1, %v385_v2, %v392_v49 }
 0x13e   :  { %v396_v9 = vsel %vm395_vm2, %v386_v4, %v394_v7 }
 0x13f   :  { %v398_v11 = vsel %vm397_vm3, %v387_v6, %v396_v9 }
 0x140   :  { %v400_v13 = vsel %vm399_vm4, %v388_v8, %v398_v11 }
 0x141   :  { %v402_v14 = vsel %vm401_vm5, %v389_v10, %v400_v13 }
 0x142   :  { %v404_v15 = vsel %vm403_vm6, %v390_v12, %v402_v14 }
 0x143   :  { %v405_v17 = vpack.c.b16 %v404_v15, %v404_v15 }
 0x145   :  { %407 = vst [vmem:[#allocation7] sm:$0xf] %v405_v17 }
 0x146   :  { %597 = shalt.err (!%p594_p6)
}
 0x147   :  { %s598_s15 = scalar_lea.hbm %s681_s3, 64 }
 0x148   :  { %p599_p7 = scmp.ne.s32.totalorder %s681_s3, %s598_s15  ;;  %p602_p8 = scmp.lt.u32.totalorder %s598_s15, %s681_s3 }
 0x14a   :  { %p604_p9 = pnand %p602_p8, %p599_p7 }
 0x14c   :  { %607 = shalt.err (!%p604_p9)
}
 0x14d   :  { %417 = dma.vmem_to_hbm [thread:$0]  %s415_s11, 64, %s681_s3, [#allocation4]  }
 0x14e   :  { %612 = dma.done.wait [#allocation4], 64  }
 0x14f   :  { %613 = vsyncadd [#allocation4], 4294967232 }
 0x150   :  { %421 = vsyncpa [#allocation3], 1 }
 0x151   :  { %422 = vsyncpa [#allocation6], 1 }
 0x152   :  { %423 = vsyncpa [#allocation4], 1 }

</bundles_post_ra>
